<compile_context>
chip_gen: v5e
topology: v5e:2x2
jax: 0.10.0
libtpu: 0.0.40
codegen_flags: <defaults>
</compile_context>

<pallas_src>
import jax
import jax.numpy as jnp
from jax import lax
from jax.experimental import pallas as pl
from jax.experimental.pallas import tpu as pltpu


def _round_up(x, m):
    return (x + m - 1) // m * m


def egat_conv_forward(nfeats, efeats, src, dst, params,
                      num_heads, out_node_feats, out_edge_feats):
    n, fn = nfeats.shape
    e, fe = efeats.shape
    h, on, oe = num_heads, out_node_feats, out_edge_feats
    hoe, hon = h * oe, h * on
    slope = 0.01                                    # torch leaky_relu default
    f32, bf16 = jnp.float32, jnp.bfloat16

    # ---------------- tile sizes ----------------
    tn = 256 if n >= 256 else _round_up(n, 8)       # node tile (projection kernel)
    n_pad = _round_up(n, tn)
    te = 256 if e >= 256 else _round_up(e, 16)      # edge tile (>=256 at scale for MXU)
    e_pad = _round_up(e, te)
    proj_cols = 2 * hoe + hon

    # ---- fused node projection weight [W_ni | W_nj | W_node] with b_node folded ----
    w_all = jnp.concatenate([params["w_ni"], params["w_nj"], params["w_node"]], axis=1)
    b_all = jnp.concatenate([jnp.zeros((1, 2 * hoe), f32), params["b_node"]], axis=1)
    w_all_aug = jnp.concatenate([w_all, b_all], axis=0).astype(bf16)      # (Fn+1, P)
    x_aug = jnp.concatenate([nfeats, jnp.ones((n, 1), f32)], axis=1)
    x_aug = jnp.pad(x_aug, ((0, n_pad - n), (0, 0))).astype(bf16)         # (N_pad, Fn+1)

    # ---- fused edge-side weight [W_fij ; b_edge] ----
    w_fij_aug = jnp.concatenate([params["w_fij"], params["b_edge"]], axis=0).astype(bf16)
    ef_aug = jnp.concatenate([efeats, jnp.ones((e, 1), f32)], axis=1)
    ef_aug = jnp.pad(ef_aug, ((0, e_pad - e), (0, 0))).astype(bf16)       # (E_pad, Fe+1)

    # ---- attention weight spread so per-head logits come out 128-lane replicated ----
    # scores_rep[e, k*On + on] = sum_oe f_out[e, k*Oe + oe] * attn[k, oe]
    attn_hs = params["attn"].reshape(h, oe).astype(f32)
    spread = attn_hs[:, :, None, None] * jnp.eye(h, dtype=f32)[:, None, :, None]
    attn_spread = jnp.broadcast_to(spread, (h, oe, h, on)).reshape(hoe, hon).astype(bf16)

    src_pad = jnp.zeros((e_pad,), jnp.int32).at[:e].set(src.astype(jnp.int32))
    dst_pad = jnp.zeros((e_pad,), jnp.int32).at[:e].set(dst.astype(jnp.int32))

    # ================= Kernel A: fused node projections ======================
    def proj_kernel(x_ref, w_ref, o_ref):
        o_ref[...] = jnp.dot(x_ref[...], w_ref[...], preferred_element_type=f32)

    proj = pl.pallas_call(
        proj_kernel,
        out_shape=jax.ShapeDtypeStruct((n_pad, proj_cols), f32),
        grid=(n_pad // tn,),
        in_specs=[pl.BlockSpec((tn, fn + 1), lambda i: (i, 0)),
                  pl.BlockSpec((fn + 1, proj_cols), lambda i: (0, 0))],
        out_specs=pl.BlockSpec((tn, proj_cols), lambda i: (i, 0)),
        compiler_params=pltpu.CompilerParams(dimension_semantics=("parallel",)),
        cost_estimate=pl.CostEstimate(
            flops=2 * n_pad * (fn + 1) * proj_cols,
            transcendentals=0,
            bytes_accessed=(n_pad * (fn + 1) * 2 + (fn + 1) * proj_cols * 2
                            + n_pad * proj_cols * 4)),
    )(x_aug, w_all_aug)

    # ================= Kernel B: edge features + edge softmax + aggregation ==
    def edge_kernel(src_ref, dst_ref,                       # scalar prefetch (SMEM)
                    ef_ref, wfij_ref, proj_ref, attn_ref,   # inputs
                    f_out_ref, h_out_ref,                   # outputs
                    g_ni, g_nj, g_h, s_scr, m_scr, den_scr, num_scr):
        t = pl.program_id(0)
        base = t * te

        @pl.when(t == 0)
        def _init():
            m_scr[...] = jnp.full_like(m_scr, -1e30)
            den_scr[...] = jnp.zeros_like(den_scr)
            num_scr[...] = jnp.zeros_like(num_scr)

        # gather projected rows for this edge tile (in-kernel gather, O(E*D))
        def gather(i, carry):
            s_idx = src_ref[base + i]
            d_idx = dst_ref[base + i]
            g_ni[pl.ds(i, 1), :] = proj_ref[pl.ds(s_idx, 1), pl.ds(0, hoe)]
            g_nj[pl.ds(i, 1), :] = proj_ref[pl.ds(d_idx, 1), pl.ds(hoe, hoe)]
            g_h[pl.ds(i, 1), :] = proj_ref[pl.ds(s_idx, 1), pl.ds(2 * hoe, hon)]
            return carry
        lax.fori_loop(0, te, gather, 0)

        # edge features + attention logits (vectorized over the tile, bf16 MXU)
        fij = jnp.dot(ef_ref[...], wfij_ref[...], preferred_element_type=f32)
        f_edge = g_ni[...] + g_nj[...] + fij
        f_out = jnp.where(f_edge > 0, f_edge, slope * f_edge)     # leaky_relu
        f_out_ref[...] = f_out
        s_scr[...] = jnp.dot(f_out.astype(bf16), attn_ref[...],
                             preferred_element_type=f32)          # (TE, H*On) replicated

        # online per-destination softmax + message accumulation (scatter)
        def scatter(i, carry):
            @pl.when(base + i < e)                  # mask padded edges (e is static)
            def _():
                d_idx = dst_ref[base + i]
                s_row = s_scr[pl.ds(i, 1), :]
                h_row = g_h[pl.ds(i, 1), :]
                m_old = m_scr[pl.ds(d_idx, 1), :]
                m_new = jnp.maximum(m_old, s_row)
                c = jnp.exp(m_old - m_new)
                p = jnp.exp(s_row - m_new)
                m_scr[pl.ds(d_idx, 1), :] = m_new
                den_scr[pl.ds(d_idx, 1), :] = den_scr[pl.ds(d_idx, 1), :] * c + p
                num_scr[pl.ds(d_idx, 1), :] = (num_scr[pl.ds(d_idx, 1), :] * c
                                               + p * h_row)
            return carry
        lax.fori_loop(0, te, scatter, 0)

        @pl.when(t == pl.num_programs(0) - 1)
        def _finalize():
            den = den_scr[...]
            h_out_ref[...] = jnp.where(den > 0.0, num_scr[...] / den, 0.0)

    def _edge_vmem_bytes():
        b = 2 * te * (fe + 1) * 2 + 2 * (fe + 1) * hoe * 2          # ef, w_fij (bf16)
        b += 2 * n_pad * proj_cols * 4 + 2 * hoe * hon * 2          # proj, attn_spread
        b += 2 * te * hoe * 4 + 2 * n_pad * hon * 4                 # outputs
        b += (2 * te * hoe + 2 * te * hon + 3 * n_pad * hon) * 4    # scratches
        return b

    # right-size the VMEM request; cap at 48 MiB so v7x (64 MiB physical) keeps headroom
    vmem_limit = int(min(48 * 1024 * 1024, max(16 * 1024 * 1024, 2 * _edge_vmem_bytes())))

    f_out_flat, h_out_flat = pl.pallas_call(
        edge_kernel,
        out_shape=(jax.ShapeDtypeStruct((e_pad, hoe), f32),
                   jax.ShapeDtypeStruct((n_pad, hon), f32)),
        grid_spec=pltpu.PrefetchScalarGridSpec(
            num_scalar_prefetch=2,
            grid=(e_pad // te,),
            in_specs=[
                pl.BlockSpec((te, fe + 1), lambda t, s, d: (t, 0)),
                pl.BlockSpec((fe + 1, hoe), lambda t, s, d: (0, 0)),
                pl.BlockSpec((n_pad, proj_cols), lambda t, s, d: (0, 0)),
                pl.BlockSpec((hoe, hon), lambda t, s, d: (0, 0)),
            ],
            out_specs=[
                pl.BlockSpec((te, hoe), lambda t, s, d: (t, 0)),
                pl.BlockSpec((n_pad, hon), lambda t, s, d: (0, 0)),
            ],
            scratch_shapes=[
                pltpu.VMEM((te, hoe), f32),        # gathered f_ni[src]
                pltpu.VMEM((te, hoe), f32),        # gathered f_nj[dst]
                pltpu.VMEM((te, hon), f32),        # gathered h_node[src]
                pltpu.VMEM((te, hon), f32),        # per-head scores, lane-replicated
                pltpu.VMEM((n_pad, hon), f32),     # running per-dst max
                pltpu.VMEM((n_pad, hon), f32),     # running per-dst denominator
                pltpu.VMEM((n_pad, hon), f32),     # running per-dst numerator
            ],
        ),
        compiler_params=pltpu.CompilerParams(
            dimension_semantics=("arbitrary",),    # per-dst accumulators => sequential
            vmem_limit_bytes=vmem_limit,
        ),
        cost_estimate=pl.CostEstimate(
            flops=2 * e_pad * (fe + 1) * hoe + 2 * e_pad * hoe * hon + 10 * e_pad * hon,
            transcendentals=2 * e_pad * hon,
            bytes_accessed=(e_pad * (fe + 1) * 2 + (fe + 1) * hoe * 2
                            + n_pad * proj_cols * 4 + hoe * hon * 2
                            + e_pad * hoe * 4 + n_pad * hon * 4 + 2 * e_pad * 4)),
    )(src_pad, dst_pad, ef_aug, w_fij_aug, proj, attn_spread)

    h_out = h_out_flat[:n].reshape(n, h, on)
    f_out = f_out_flat[:e].reshape(e, h, oe)
    return h_out, f_out


# ---------------- pure-JAX reference (for a loose self-check) ----------------
def egat_reference(nfeats, efeats, src, dst, params, num_heads, on, oe):
    h = num_heads
    n = nfeats.shape[0]
    f_ni = nfeats @ params["w_ni"]
    f_nj = nfeats @ params["w_nj"]
    f_fij = efeats @ params["w_fij"]
    h_node = nfeats @ params["w_node"] + params["b_node"]
    f_edge = f_ni[src] + f_nj[dst] + f_fij + params["b_edge"]
    f_out = jnp.where(f_edge > 0, f_edge, 0.01 * f_edge)
    scores = (f_out.reshape(-1, h, oe) * params["attn"].reshape(1, h, oe)).sum(-1)
    smax = jax.ops.segment_max(scores, dst, num_segments=n)
    ex = jnp.exp(scores - smax[dst])
    den = jax.ops.segment_sum(ex, dst, num_segments=n)
    a = ex / den[dst]
    msgs = (a[:, :, None] * h_node[src].reshape(-1, h, on)).reshape(-1, h * on)
    h_out = jax.ops.segment_sum(msgs, dst, num_segments=n).reshape(n, h, on)
    return h_out, f_out.reshape(-1, h, oe)


# -----------------------------------------------------------------------------
if __name__ == "__main__":
    in_node_feats = 32
    in_edge_feats = 16
    out_node_feats = 16
    out_edge_feats = 16
    num_heads = 8                       # H*Oe = H*On = 128 -> lane-dense outputs

    n_nodes = 16
    # deterministic graph: node i receives edges from {i, i-1, i+2} (mod N)
    src_list, dst_list = [], []
    for i in range(n_nodes):
        for j in (i, (i - 1) % n_nodes, (i + 2) % n_nodes):
            src_list.append(j)
            dst_list.append(i)
    src = jnp.array(src_list, dtype=jnp.int32)
    dst = jnp.array(dst_list, dtype=jnp.int32)
    n_edges = int(src.shape[0])         # 48

    key = jax.random.PRNGKey(0)
    ks = jax.random.split(key, 8)
    init = lambda k, s: 0.1 * jax.random.normal(k, s, jnp.float32)

    params = {
        "w_ni":   init(ks[0], (in_node_feats, num_heads * out_edge_feats)),
        "w_nj":   init(ks[1], (in_node_feats, num_heads * out_edge_feats)),
        "w_node": init(ks[2], (in_node_feats, num_heads * out_node_feats)),
        "w_fij":  init(ks[3], (in_edge_feats, num_heads * out_edge_feats)),
        "b_node": init(ks[4], (1, num_heads * out_node_feats)),
        # reset_parameters: init.constant_(self.bias, 0)
        "b_edge": jnp.zeros((1, num_heads * out_edge_feats), jnp.float32),
        "attn":   init(ks[5], (1, num_heads, out_edge_feats)),
    }
    nfeats = jax.random.normal(ks[6], (n_nodes, in_node_feats), jnp.float32)
    efeats = jax.random.normal(ks[7], (n_edges, in_edge_feats), jnp.float32)

    h_out, f_out = egat_conv_forward(nfeats, efeats, src, dst, params,
                                     num_heads, out_node_feats, out_edge_feats)
    jax.block_until_ready((h_out, f_out))
    assert h_out.shape == (n_nodes, num_heads, out_node_feats)
    assert f_out.shape == (n_edges, num_heads, out_edge_feats)

    # loose check vs f32 reference (bf16 MXU operands introduce ~1% noise)
    h_ref, f_ref = egat_reference(nfeats, efeats, src, dst, params,
                                  num_heads, out_node_feats, out_edge_feats)
    assert bool(jnp.allclose(f_out, f_ref, atol=5e-2, rtol=5e-2)), (
        "f_out mismatch, max abs err = %f" % float(jnp.max(jnp.abs(f_out - f_ref))))
    assert bool(jnp.allclose(h_out, h_ref, atol=5e-2, rtol=5e-2)), (
        "h_out mismatch, max abs err = %f" % float(jnp.max(jnp.abs(h_out - h_ref))))
    print("KERNEL_OK")
</pallas_src>

<mosaic_0001>
module attributes {stable_mosaic.version = 11 : i64} {
  func.func @proj_kernel(%arg0: i32, %arg1: memref<16x33xbf16, #tpu.memory_space<vmem>>, %arg2: memref<33x384xbf16, #tpu.memory_space<vmem>>, %arg3: memref<16x384xf32, #tpu.memory_space<vmem>>) attributes {dimension_semantics = [#tpu.dimension_semantics<parallel>], iteration_bounds = array<i64: 1>, scalar_prefetch = 0 : i64, scratch_operands = 0 : i64, tpu.core_type = #tpu.core_type<tc>, window_params = [{transform_indices = @transform_0, window_bounds = array<i64: 16, 33>}, {pipeline_mode = #tpu.pipeline_mode<synchronous>, transform_indices = @transform_1, window_bounds = array<i64: 33, 384>}, {transform_indices = @transform_2, window_bounds = array<i64: 16, 384>}]} {
    %c0 = arith.constant 0 : index
    %c0_0 = arith.constant 0 : index
    %0 = vector.load %arg1[%c0, %c0_0] : memref<16x33xbf16, #tpu.memory_space<vmem>>, vector<16x33xbf16>
    %c0_1 = arith.constant 0 : index
    %c0_2 = arith.constant 0 : index
    %1 = vector.load %arg2[%c0_1, %c0_2] : memref<33x384xbf16, #tpu.memory_space<vmem>>, vector<33x384xbf16>
    %cst = arith.constant dense<0.000000e+00> : vector<16x384xf32>
    %2 = tpu.matmul %0, %1, %cst {dimension_numbers = #tpu.dot_dimension_numbers<[1], [0], [0], [1], [0, 0, 1, 1], [], []>} : vector<16x33xbf16>, vector<33x384xbf16>, vector<16x384xf32> -> vector<16x384xf32>
    %c0_3 = arith.constant 0 : index
    %c0_4 = arith.constant 0 : index
    %3 = vector.load %arg3[%c0_3, %c0_4] : memref<16x384xf32, #tpu.memory_space<vmem>>, vector<16x384xf32>
    tpu.vector_store %arg3[%c0_3, %c0_4], %2 {strides = array<i32>} : memref<16x384xf32, #tpu.memory_space<vmem>>, vector<16x384xf32>,
    return
  }
  func.func @transform_0(%arg0: i32) -> (i32, i32) {
    %c0_i32 = arith.constant 0 : i32
    %c0_i32_0 = arith.constant 0 : i32
    return %arg0, %c0_i32 : i32, i32
  }
  func.func @transform_1(%arg0: i32) -> (i32, i32) {
    %c0_i32 = arith.constant 0 : i32
    %c0_i32_0 = arith.constant 0 : i32
    %c0_i32_1 = arith.constant 0 : i32
    return %c0_i32, %c0_i32_0 : i32, i32
  }
  func.func @transform_2(%arg0: i32) -> (i32, i32) {
    %c0_i32 = arith.constant 0 : i32
    %c0_i32_0 = arith.constant 0 : i32
    return %arg0, %c0_i32 : i32, i32
  }
}

</mosaic_0001>

<bundles_post_ra>
// kernel: tpu_custom_call.1
= control target key start
LH: loop header
LB: loop body
LE: loop exit
PB: predicated region body
PF: predicated region fallthrough
CT: control target
= control target key end

     0   :  { %7 = vsyncpa [#allocation3], 0  ;;  %s346_s0 = inlined_call_operand.hbm [shape: bf16[16,33], index: 0, kind: input, shape index: {}]   ;;  %s347_s1 = inlined_call_operand.hbm [shape: bf16[33,384], index: 1, kind: input, shape index: {}]   ;;  %s348_s2 = inlined_call_operand.hbm [shape: f32[16,384], index: 2, kind: output, shape index: {}]  }
   0x1   :  { %8 = vsyncpa [#allocation6], 0 }
   0x2   :  { %9 = vsyncpa [#allocation4], 0  ;;  %s14_s11 = sshll.u32 %s346_s0, 4  ;;  %s312_s12 = smov [#allocation2]   ;;  %s15_s11 = int_to_ptr.hbm [resolvable:$true] %s14_s11 }
   0x3   :  { %s16_s13 = sshll.u32 %s312_s12, 4  ;;  %s27_s16 = sshll.u32 %s347_s1, 4  ;;  %s17_s13 = int_to_ptr.vmem [resolvable:$true] %s16_s13  ;;  %s28_s16 = int_to_ptr.hbm [resolvable:$true] %s27_s16 }
   0x4   :  { %s313_s17 = smov 64   ;;  %s314_s18 = smov 4  }
   0x5   :  { %22 = dma.hbm_to_vmem [thread:$0]  %s15_s11, 128, %s17_s13, [#allocation3], %s313_s17, %s313_s17, %s314_s18  }
   0x6   :  { %s315_s19 = smov [#allocation5]   ;;  %s316_s21 = smov 192  }
   0x7   :  { %s29_s20 = sshll.u32 %s315_s19, 4  ;;  %s317_s22 = smov 12   ;;  %s30_s20 = int_to_ptr.vmem [resolvable:$true] %s29_s20 }
   0x8   :  { %35 = dma.hbm_to_vmem [thread:$0]  %s28_s16, 960, %s30_s20, [#allocation6], %s316_s21, %s316_s21, %s317_s22  }
   0x9   :  { %306 = dma.done.wait [#allocation3], 128  }
   0xa   :  { %307 = vsyncadd [#allocation3], 4294967168 }
   0xb   :  { %308 = dma.done.wait [#allocation6], 960  }
   0xc   :  { %309 = vsyncadd [#allocation6], 4294966336  ;;  %vm106_vm0 = vcmask 1040384   ;;  %v55_v0 = vld [vmem:[#allocation5 + $0x30] sm:$0x11]  ;;  %v318_v5 = vmov 0  }
   0xd   :  { %v56_v1 = vld [vmem:[#allocation5 + $0x38] sm:$0x1]  ;;  %v84_v2 = vunpack.c.l.b16 %v55_v0  ;;  %v85_v3 = vunpack.c.h.b16 %v55_v0  ;;  %v108_v6 = vsel %vm106_vm0, 65535, %v318_v5  ;;  %v222_v11 = vld [vmem:[#allocation5 + $0x20] sm:$0xf0]  ;;  %vm102_vm1 = vcmask 269312  }
   0xe   :  { %v86_v4 = vunpack.c.l.b16 %v56_v1  ;;  %v204_v10 = vld [vmem:[#allocation5 + $0x18] sm:$0xf]  ;;  %v221_v12 = vld [vmem:[#allocation5 + $0x1c] sm:$0xf]  ;;  %v206_v13 = vld [vmem:[#allocation5 + $0x24] sm:$0xf0] }
   0xf   :  { %v93_v7 = vpack.c.b16 %v84_v2, %v84_v2  ;;  %v94_v8 = vpack.c.b16 %v85_v3, %v85_v3  ;;  %v212_v17 = vld [vmem:[#allocation5 + $0x20] sm:$0xf]  ;;  %v223_v18 = vld [vmem:[#allocation5 + $0x28] sm:$0xf0]  ;;  %v205_v19 = vor.u32 %v222_v11, %v204_v10  ;;  %v209_v20 = vor.u32 %v221_v12, %v206_v13  ;;  %v218_v24 = vld [vmem:[#allocation5 + $0x4] sm:$0xf] }
  0x10   :  { %v95_v9 = vpack.c.b16 %v86_v4, %v86_v4  ;;  %v192_v21 = vld [vmem:[#allocation5] sm:$0xf]  ;;  %v213_v22 = vor.u32 %v223_v18, %v212_v17  ;;  %v219_v23 = vld [vmem:[#allocation5 + $0x8] sm:$0xf0]  ;;  %v194_v25 = vld [vmem:[#allocation5 + $0xc] sm:$0xf0] }
  0x11   :  { %v110_v14 = vand.u32 %v108_v6, %v93_v7  ;;  %v113_v15 = vand.u32 %v108_v6, %v94_v8  ;;  %v200_v26 = vld [vmem:[#allocation5 + $0x8] sm:$0xf]  ;;  %v220_v27 = vld [vmem:[#allocation5 + $0x10] sm:$0xf0]  ;;  %v193_v28 = vor.u32 %v219_v23, %v192_v21  ;;  %v197_v29 = vor.u32 %v218_v24, %v194_v25  ;;  %v217_v31 = vld [vmem:[#allocation2] sm:$0xff]  ;;  %s319_s0 = smov [#allocation7]  }
  0x12   :  { %v116_v16 = vand.u32 %v108_v6, %v95_v9  ;;  %v201_v30 = vor.u32 %v220_v27, %v200_v26  ;;  %s170_s1 = sshll.u32 %s319_s0, 4  ;;  %s172_s25 = sshll.u32 %s348_s2, 4  ;;  %s171_s1 = int_to_ptr.vmem [resolvable:$true] %s170_s1  ;;  %s173_s25 = int_to_ptr.hbm [resolvable:$true] %s172_s25 }
  0x13   :  { %123 = vmatpush.bf16.msra.mxu0 %v110_v14  ;;  %137 = vmatpush.bf16.msra.mxu1 %v113_v15  ;;  %s320_s26 = smov 384   ;;  %s321_s27 = smov 24  }
  0x14   :  { %151 = vmatpush.bf16.msra.mxu2 %v116_v16 }
  0x17   :  { %124 = vmatpush.bf16.msra.mxu0 %v205_v19  ;;  %138 = vmatpush.bf16.msra.mxu1 %v209_v20 }
  0x18   :  { %152 = vmatpush.bf16.msra.mxu2 %v213_v22 }
  0x1b   :  { %125 = vmatpush.bf16.msra.mxu0 %v193_v28  ;;  %139 = vmatpush.bf16.msra.mxu1 %v197_v29 }
  0x1c   :  { %153 = vmatpush.bf16.msra.mxu2 %v201_v30 }
  0x1e   :  { %214 = vmatmul.msk.bf16.vlgmr.msra.gmra.mxu0 %vm102_vm1, %v217_v31  ;;  %215 = vmatmul.msk.bf16.vlgmr.msra.gmra.mxu1 %vm102_vm1, %v217_v31 }
  0x1f   :  { %216 = vmatmul.msk.bf16.vlgmr.msra.gmra.mxu2 %vm102_vm1, %v217_v31 }
  0x9b   :  { %v127_v32 = vpop.f32.mrf.mxu0  ;;  %v141_v33 = vpop.f32.mrf.mxu1 }
  0x9c   :  { %160 = vst [vmem:[#allocation7] sm:$0xff] %v127_v32 }
  0x9d   :  { %161 = vst [vmem:[#allocation7 + $0x8] sm:$0xff] %v141_v33 }
  0xa2   :  { %v155_v34 = vpop.f32.mrf.mxu2 }
  0xa3   :  { %162 = vst [vmem:[#allocation7 + $0x10] sm:$0xff] %v155_v34  ;;  %v129_v35 = vpop.f32.mrf.mxu0  ;;  %v143_v36 = vpop.f32.mrf.mxu1 }
  0xa4   :  { %163 = vst [vmem:[#allocation7 + $0x18] sm:$0xff] %v129_v35 }
  0xa5   :  { %164 = vst [vmem:[#allocation7 + $0x20] sm:$0xff] %v143_v36 }
  0xaa   :  { %v157_v37 = vpop.f32.mrf.mxu2 }
  0xab   :  { %165 = vst [vmem:[#allocation7 + $0x28] sm:$0xff] %v157_v37 }
  0xac   :  { %178 = dma.vmem_to_hbm [thread:$0]  %s171_s1, 768, %s173_s25, [#allocation4], %s320_s26, %s320_s26, %s321_s27  }
  0xad   :  { %310 = dma.done.wait [#allocation4], 768  }
  0xae   :  { %311 = vsyncadd [#allocation4], 4294966528 }
  0xaf   :  { %183 = vsyncpa [#allocation3], 1 }
  0xb0   :  { %184 = vsyncpa [#allocation6], 1 }
  0xb1   :  { %185 = vsyncpa [#allocation4], 1 }

</bundles_post_ra>
